<compile_context>
chip_gen: v6e
topology: v6e:2x2x1
jax: 0.10.0
libtpu: 0.0.40
codegen_flags: <defaults>
</compile_context>

<pallas_src>
import jax
import jax.numpy as jnp
from jax import lax
from jax.experimental import pallas as pl
from jax.experimental.pallas import tpu as pltpu


def _round_up(n, m):
    return (n + m - 1) // m * m


def mlp_kernel(x_ref, w1_ref, b1_ref, w2_ref, b2_ref, w3_ref, b3_ref, o_ref):
    # layer 1: Linear(537 -> 128) + ReLU -- dominant GEMM on the MXU (K=537,
    # Mosaic lane-pads the VMEM tile; no HBM-side padding needed).
    h1 = jnp.dot(x_ref[...], w1_ref[...], preferred_element_type=jnp.float32)
    h1 = jnp.maximum(h1 + b1_ref[...], 0.0)
    # layer 2: Linear(128 -> 64) + ReLU
    h2 = jnp.dot(h1, w2_ref[...], preferred_element_type=jnp.float32)
    h2 = jnp.maximum(h2 + b2_ref[...], 0.0)
    # layer 3: Linear(64 -> 1), computed as (1,64) @ (tile_b,64)^T -> (1,tile_b)
    # so the per-step output row is lane-dense (unmasked full-lane stores).
    out_row = lax.dot_general(
        w3_ref[...], h2,
        dimension_numbers=(((1,), (1,)), ((), ())),
        preferred_element_type=jnp.float32)                 # (1, tile_b)
    o_ref[...] = (out_row + b3_ref[0, 0])[None]             # (1, 1, tile_b)


def mlp_forward(x, params, *, tile_b=2048):
    """x: [B, 537] float32; params: dict of weights/biases. Returns [B, 1]."""
    w1, b1, w2, b2, w3, b3 = (
        params["w1"], params["b1"], params["w2"],
        params["b2"], params["w3"], params["b3"],
    )
    B, F = x.shape
    H1 = w1.shape[1]          # 128
    H2 = w2.shape[1]          # 64

    # Batch tile: multiple of 8 sublanes, clamped to (rounded-up) batch size.
    tile_b = _round_up(max(8, min(tile_b, _round_up(B, 8))), 8)
    num_tiles = pl.cdiv(B, tile_b)

    w3_row = w3.reshape(1, H2)    # (1, 64) row for the lane-dense layer-3 product
    b3_smem = b3.reshape(1, 1)    # scalar bias, lives in SMEM

    flops = 2 * B * (F * H1 + H1 * H2 + H2)
    bytes_accessed = 4 * (B * F + B + F * H1 + H1 * H2 + H2 * 1 + H1 + H2 + 1)

    out = pl.pallas_call(
        mlp_kernel,
        out_shape=jax.ShapeDtypeStruct((num_tiles, 1, tile_b), jnp.float32),
        grid=(num_tiles,),
        in_specs=[
            pl.BlockSpec((tile_b, F), lambda i: (i, 0)),        # x tile (K=537, unpadded)
            pl.BlockSpec((F, H1),     lambda i: (0, 0)),        # w1: VMEM-resident
            pl.BlockSpec((1, H1),     lambda i: (0, 0)),        # b1
            pl.BlockSpec((H1, H2),    lambda i: (0, 0)),        # w2
            pl.BlockSpec((1, H2),     lambda i: (0, 0)),        # b2
            pl.BlockSpec((1, H2),     lambda i: (0, 0)),        # w3 row
            pl.BlockSpec(memory_space=pltpu.MemorySpace.SMEM),  # b3 scalar
        ],
        out_specs=pl.BlockSpec((1, 1, tile_b), lambda i: (i, 0, 0)),
        compiler_params=pltpu.CompilerParams(
            dimension_semantics=("parallel",),
            vmem_limit_bytes=48 * 1024 * 1024),
        cost_estimate=pl.CostEstimate(
            flops=flops, transcendentals=0, bytes_accessed=bytes_accessed),
    )(x, w1, b1, w2, b2, w3_row, b3_smem)

    # (num_tiles, 1, tile_b) -> (B, 1). Rows >= B of the partial last tile hold
    # undefined values (from out-of-bounds input rows) and are dropped here.
    return out.reshape(-1)[:B].reshape(B, 1)


def init_params(key, input_size=537, hidden=(128, 64), output_size=1):
    """Deterministic init mimicking PyTorch nn.Linear default (U[-1/sqrt(fan_in), +])."""
    sizes = [input_size, *hidden, output_size]
    params = {}
    for i, (fin, fout) in enumerate(zip(sizes[:-1], sizes[1:]), start=1):
        key, kw, kb = jax.random.split(key, 3)
        bound = 1.0 / jnp.sqrt(jnp.float32(fin))
        # stored as [fin, fout] (transpose of torch's [fout, fin]) for row-major GEMM
        params[f"w{i}"] = jax.random.uniform(
            kw, (fin, fout), jnp.float32, minval=-bound, maxval=bound)
        params[f"b{i}"] = jax.random.uniform(
            kb, (1, fout), jnp.float32, minval=-bound, maxval=bound)
    return params


def mlp_reference(x, params):
    h = jnp.maximum(x @ params["w1"] + params["b1"], 0.0)
    h = jnp.maximum(h @ params["w2"] + params["b2"], 0.0)
    return h @ params["w3"] + params["b3"]


if __name__ == "__main__":
    key = jax.random.PRNGKey(0)
    kx, kp = jax.random.split(key)

    B, F = 40, 537  # small batch; feature dim fixed by the module (input_size=537)
    x = jax.random.normal(kx, (B, F), dtype=jnp.float32)
    params = init_params(kp, input_size=F)

    # Small tile_b so the demo exercises a multi-step grid and a partial last tile.
    out = mlp_forward(x, params, tile_b=16)
    out = jax.block_until_ready(out)

    ref = mlp_reference(x, params)
    assert out.shape == (B, 1), out.shape
    assert jnp.allclose(out, ref, atol=1e-4, rtol=1e-4), "mismatch vs reference"

    print("KERNEL_OK")
</pallas_src>

<mosaic_0001>
module attributes {stable_mosaic.version = 11 : i64} {
  func.func @mlp_kernel(%arg0: i32, %arg1: memref<16x537xf32, #tpu.memory_space<vmem>>, %arg2: memref<537x128xf32, #tpu.memory_space<vmem>>, %arg3: memref<1x128xf32, #tpu.memory_space<vmem>>, %arg4: memref<128x64xf32, #tpu.memory_space<vmem>>, %arg5: memref<1x64xf32, #tpu.memory_space<vmem>>, %arg6: memref<1x64xf32, #tpu.memory_space<vmem>>, %arg7: memref<1x1xf32, #tpu.memory_space<smem>>, %arg8: memref<1x1x16xf32, #tpu.memory_space<vmem>>) attributes {dimension_semantics = [#tpu.dimension_semantics<parallel>], iteration_bounds = array<i64: 3>, scalar_prefetch = 0 : i64, scratch_operands = 0 : i64, tpu.core_type = #tpu.core_type<tc>, window_params = [{transform_indices = @transform_0, window_bounds = array<i64: 16, 537>}, {pipeline_mode = #tpu.pipeline_mode<synchronous>, transform_indices = @transform_1, window_bounds = array<i64: 537, 128>}, {pipeline_mode = #tpu.pipeline_mode<synchronous>, transform_indices = @transform_2, window_bounds = array<i64: 1, 128>}, {pipeline_mode = #tpu.pipeline_mode<synchronous>, transform_indices = @transform_3, window_bounds = array<i64: 128, 64>}, {pipeline_mode = #tpu.pipeline_mode<synchronous>, transform_indices = @transform_4, window_bounds = array<i64: 1, 64>}, {pipeline_mode = #tpu.pipeline_mode<synchronous>, transform_indices = @transform_5, window_bounds = array<i64: 1, 64>}, {transform_indices = @transform_6, window_bounds = array<i64: 1, 1>}, {transform_indices = @transform_7, window_bounds = array<i64: 1, 1, 16>}]} {
    %c0 = arith.constant 0 : index
    %c0_0 = arith.constant 0 : index
    %0 = vector.load %arg1[%c0, %c0_0] : memref<16x537xf32, #tpu.memory_space<vmem>>, vector<16x537xf32>
    %c0_1 = arith.constant 0 : index
    %c0_2 = arith.constant 0 : index
    %1 = vector.load %arg2[%c0_1, %c0_2] : memref<537x128xf32, #tpu.memory_space<vmem>>, vector<537x128xf32>
    %cst = arith.constant dense<0.000000e+00> : vector<16x128xf32>
    %2 = tpu.matmul %0, %1, %cst {dimension_numbers = #tpu.dot_dimension_numbers<[1], [0], [0], [1], [0, 0, 1, 1], [], []>} : vector<16x537xf32>, vector<537x128xf32>, vector<16x128xf32> -> vector<16x128xf32>
    %c0_3 = arith.constant 0 : index
    %c0_4 = arith.constant 0 : index
    %3 = vector.load %arg3[%c0_3, %c0_4] : memref<1x128xf32, #tpu.memory_space<vmem>>, vector<1x128xf32>
    %4 = vector.broadcast %3 : vector<1x128xf32> to vector<16x128xf32>
    %5 = arith.addf %2, %4 : vector<16x128xf32>
    %cst_5 = arith.constant 0.000000e+00 : f32
    %6 = vector.broadcast %cst_5 : f32 to vector<16x128xf32>
    %7 = arith.maximumf %5, %6 : vector<16x128xf32>
    %c0_6 = arith.constant 0 : index
    %c0_7 = arith.constant 0 : index
    %8 = vector.load %arg4[%c0_6, %c0_7] : memref<128x64xf32, #tpu.memory_space<vmem>>, vector<128x64xf32>
    %cst_8 = arith.constant dense<0.000000e+00> : vector<16x64xf32>
    %9 = tpu.matmul %7, %8, %cst_8 {dimension_numbers = #tpu.dot_dimension_numbers<[1], [0], [0], [1], [0, 0, 1, 1], [], []>} : vector<16x128xf32>, vector<128x64xf32>, vector<16x64xf32> -> vector<16x64xf32>
    %c0_9 = arith.constant 0 : index
    %c0_10 = arith.constant 0 : index
    %10 = vector.load %arg5[%c0_9, %c0_10] : memref<1x64xf32, #tpu.memory_space<vmem>>, vector<1x64xf32>
    %11 = vector.broadcast %10 : vector<1x64xf32> to vector<16x64xf32>
    %12 = arith.addf %9, %11 : vector<16x64xf32>
    %cst_11 = arith.constant 0.000000e+00 : f32
    %13 = vector.broadcast %cst_11 : f32 to vector<16x64xf32>
    %14 = arith.maximumf %12, %13 : vector<16x64xf32>
    %c0_12 = arith.constant 0 : index
    %c0_13 = arith.constant 0 : index
    %15 = vector.load %arg6[%c0_12, %c0_13] : memref<1x64xf32, #tpu.memory_space<vmem>>, vector<1x64xf32>
    %cst_14 = arith.constant dense<0.000000e+00> : vector<1x16xf32>
    %16 = tpu.matmul %15, %14, %cst_14 {dimension_numbers = #tpu.dot_dimension_numbers<[1], [1], [0], [0], [0, 0, 1, 0], [], []>} : vector<1x64xf32>, vector<16x64xf32>, vector<1x16xf32> -> vector<1x16xf32>
    %c0_15 = arith.constant 0 : index
    %c0_16 = arith.constant 0 : index
    %17 = memref.load %arg7[%c0_15, %c0_16] : memref<1x1xf32, #tpu.memory_space<smem>>
    %18 = vector.broadcast %17 : f32 to vector<1x16xf32>
    %19 = arith.addf %16, %18 : vector<1x16xf32>
    %20 = vector.shape_cast %19 : vector<1x16xf32> to vector<1x1x16xf32>
    %c0_17 = arith.constant 0 : index
    %c0_18 = arith.constant 0 : index
    %c0_19 = arith.constant 0 : index
    %21 = vector.load %arg8[%c0_17, %c0_18, %c0_19] : memref<1x1x16xf32, #tpu.memory_space<vmem>>, vector<1x1x16xf32>
    tpu.vector_store %arg8[%c0_17, %c0_18, %c0_19], %20 {strides = array<i32>} : memref<1x1x16xf32, #tpu.memory_space<vmem>>, vector<1x1x16xf32>,
    return
  }
  func.func @transform_0(%arg0: i32) -> (i32, i32) {
    %c0_i32 = arith.constant 0 : i32
    %c0_i32_0 = arith.constant 0 : i32
    return %arg0, %c0_i32 : i32, i32
  }
  func.func @transform_1(%arg0: i32) -> (i32, i32) {
    %c0_i32 = arith.constant 0 : i32
    %c0_i32_0 = arith.constant 0 : i32
    %c0_i32_1 = arith.constant 0 : i32
    return %c0_i32, %c0_i32_0 : i32, i32
  }
  func.func @transform_2(%arg0: i32) -> (i32, i32) {
    %c0_i32 = arith.constant 0 : i32
    %c0_i32_0 = arith.constant 0 : i32
    %c0_i32_1 = arith.constant 0 : i32
    return %c0_i32, %c0_i32_0 : i32, i32
  }
  func.func @transform_3(%arg0: i32) -> (i32, i32) {
    %c0_i32 = arith.constant 0 : i32
    %c0_i32_0 = arith.constant 0 : i32
    %c0_i32_1 = arith.constant 0 : i32
    return %c0_i32, %c0_i32_0 : i32, i32
  }
  func.func @transform_4(%arg0: i32) -> (i32, i32) {
    %c0_i32 = arith.constant 0 : i32
    %c0_i32_0 = arith.constant 0 : i32
    %c0_i32_1 = arith.constant 0 : i32
    return %c0_i32, %c0_i32_0 : i32, i32
  }
  func.func @transform_5(%arg0: i32) -> (i32, i32) {
    %c0_i32 = arith.constant 0 : i32
    %c0_i32_0 = arith.constant 0 : i32
    %c0_i32_1 = arith.constant 0 : i32
    return %c0_i32, %c0_i32_0 : i32, i32
  }
  func.func @transform_6(%arg0: i32) -> (i32, i32) {
    %c0_i32 = arith.constant 0 : i32
    %c0_i32_0 = arith.constant 0 : i32
    %c0_i32_1 = arith.constant 0 : i32
    return %c0_i32, %c0_i32_0 : i32, i32
  }
  func.func @transform_7(%arg0: i32) -> (i32, i32, i32) {
    %c0_i32 = arith.constant 0 : i32
    %c0_i32_0 = arith.constant 0 : i32
    %c0_i32_1 = arith.constant 0 : i32
    return %arg0, %c0_i32, %c0_i32_0 : i32, i32, i32
  }
}

</mosaic_0001>

<bundles_post_ra>
// kernel: tpu_custom_call.1
= control target key start
LH: loop header
LB: loop body
LE: loop exit
PB: predicated region body
PF: predicated region fallthrough
CT: control target
= control target key end

     0   :  { %s1579_s0 = inlined_call_operand.hbm [shape: f32[40,537], index: 0, kind: input, shape index: {}]   ;;  %s1580_s1 = inlined_call_operand.hbm [shape: f32[537,128], index: 1, kind: input, shape index: {}]   ;;  %s1581_s2 = inlined_call_operand.vmem [shape: f32[1,128], index: 2, kind: input, shape index: {}]   ;;  %s1582_s3 = inlined_call_operand.vmem [shape: f32[128,64], index: 3, kind: input, shape index: {}]   ;;  %s1583_s4 = inlined_call_operand.vmem [shape: f32[1,64], index: 4, kind: input, shape index: {}]   ;;  %s1584_s5 = inlined_call_operand.vmem [shape: f32[1,64], index: 5, kind: input, shape index: {}]   ;;  %s1585_s6 = inlined_call_operand.<no memory space> [shape: f32[1,1], index: 6, kind: input, shape index: {}]   ;;  %s1586_s7 = inlined_call_operand.hbm [shape: f32[3,1,16], index: 7, kind: output, shape index: {}]  }
   0x1   :  { %12 = sst [smem:[#allocation2]] %s1585_s6 }
   0x2   :  { %13 = vsyncpa [#allocation4], 0 }
   0x3   :  { %15 = vsyncpa [#allocation4 + $0x1], 0 }
   0x4   :  { %16 = vsyncpa [#allocation7], 0 }
   0x5   :  { %17 = vsyncpa [#allocation5], 0 }
   0x6   :  { %19 = vsyncpa [#allocation5 + $0x1], 0  ;;  %s1337_s26 = smov 0   ;;  %s1339_s27 = smov 0  }
   0x7   :  { %s1341_s28 = smov 0   ;;  %s1343_s29 = smov 0  }
   0x8 LB: > { %s1358_s6 = sadd.s32 4294967295, %s1283_s29   ;;  %s923_s30 = sadd.s32 4294967294, %s1283_s29   ;;  %s1283_s29 = sphi %s1343_s29, %s1600_s29   ;;  %s1279_s28 = sphi %s1341_s28, %s1599_s28   ;;  %s1275_s27 = sphi %s1339_s27, %s1598_s27   ;;  %s1271_s26 = sphi %s1337_s26, %s1597_s26  }
   0x9   : > { %s1362_s8 = sadd.s32 1, %s1283_s29   ;;  %s32_s9 = sadd.s32 1, %s1279_s28 }
   0xa   : > { %s29_s10 = ssub.s32 %s1283_s29, %s1362_s8  ;;  %p39_p0 = scmp.ne.s32.totalorder %s1279_s28, %s1275_s27 }
   0xb   : > { %p30_p1 = scmp.eq.s32.totalorder %s29_s10, 0  ;;  %p40_p2 = scmp.eq.s32.totalorder %s1283_s29, 0 }
   0xc   : > { %p45_p3 = scmp.ne.s32.totalorder %s1275_s27, %s1271_s26  ;;  %p46_p4 = scmp.eq.s32.totalorder %s1358_s6, 0 }
   0xd   : > { %s1374_s11 = scalar_select %p30_p1, %s1279_s28, %s32_s9  }
   0xe   : > { %p1376_p5 = por %p40_p2, %p39_p0  ;;  %p1382_p6 = por %p46_p4, %p45_p3 }
   0xf   : > { %p195_p7 = scmp.eq.s32.totalorder %s1358_s6, 2  ;;  %p201_p8 = scmp.eq.s32.totalorder %s923_s30, 2 }
  0x10   : > { %s1590_s13 = scalar_select %p1382_p6, 1, 0 }
  0x11   : > { %p924_p9 = scmp.ge.s32.totalorder %s1283_s29, 1  ;;  %p208_p10 = scmp.lt.s32.totalorder %s1283_s29, 4 }
  0x12   : > { %p1389_p11 = por %p195_p7, %p39_p0  ;;  %p1393_p12 = por %p201_p8, %p45_p3 }
  0x13   : > { %p1397_p13 = pnand %p924_p9, %p208_p10  ;;  %s1285_s17 = smov [#allocation6]  }
  0x14   : > { %s1591_s14 = scalar_select %p1389_p11, 1, 0 }
  0x15   : > { %s1592_s15 = scalar_select %p1393_p12, 1, 0 }
  0x16   : > { %p1113_p1 = pneg %p1397_p13  ;;  %s220_s18 = sshll.u32 %s1285_s17, 4  ;;  %s221_s18 = int_to_ptr.vmem [resolvable:$true] %s220_s18 }
  0x17   : > { %s1174_s19 = scalar_lea.vmem %s221_s18, 8704  ;;  %p1182_p8 = scmp.lt.s32.totalorder %s221_s18, %s221_s18 }
  0x18   : > { %p1114_p2 = pnand %p1113_p1, %p46_p4  ;;  %p1175_p7 = scmp.ne.s32.totalorder %s221_s18, %s1174_s19 }
  0x19   : > { %p1183_p6 = scmp.lt.s32.totalorder %s1174_s19, %s1174_s19 }
  0x1a   : > { %p1165_p0 = pneg %p1114_p2 }
  0x1b   : > { %p1184_p12 = por %p1183_p6, %p1182_p8 }
  0x1c   : > { %p1177_p11 = pnand %p1175_p7, %p1165_p0 }
  0x1e   : > { %p1178_p3 = pneg %p1177_p11 }
  0x20   : > { %p1185_p9 = pnand %p1184_p12, %p1178_p3 }
  0x22   : > { %1188 = shalt.err (!%p1185_p9)
}
  0x23   : > { %s1286_s20 = smov 128   ;;  %s1287_s21 = smov 8  }
  0x24   : > { %1116 = dma.hbm_to_vmem [thread:$0]  (!%p1114_p2), %s1580_s1, 8704, %s221_s18, [#allocation7], %s1286_s20, %s1286_s20, %s1287_s21  }
  0x25   : > { %p926_p10 = scmp.ge.s32.totalorder %s1283_s29, 3 }
  0x27   : > { %245 = sbr.rel (%p926_p10) target bundleno = 78 (0x4e), region = 40 }
  0x2c   : > { %248 = sbr.rel (!%p1376_p5) target bundleno = 78 (0x4e), region = 44  ;;  %s249_s24 = sand.u32 (%p1376_p5), 1, %s1279_s28  }
  0x2d   : > { %s927_s25 = sshll.u32 (%p1376_p5), %s1283_s29, 1  ;;  %s1103_s30 = smul.u32 (%p1376_p5), 80, %s249_s24 }
  0x2e   : > { %s255_s9 = ssub.s32 (%p1376_p5), 5, %s927_s25  ;;  %s1416_s19 = scalar_lea.sflag (%p1376_p5), [#allocation4], %s249_s24 }
  0x2f   : > { %p256_p6 = scmp.lt.s32.totalorder (%p1376_p5), %s255_s9, 2  ;;  %s253_s18 = scalar_lea.vmem (%p1376_p5), [#allocation3], %s1103_s30 }
  0x31   : > { %s1602_s9 = smov (!%p256_p6, %s255_s9), 2 }
  0x32   : > { %s1413_s10 = smul.u32 640, %s1602_s9 }
  0x34   : > { %s261_s17 = ssub.s32 1280, %s1413_s10 }
  0x35   : > { %262 = vsyncadd %s1416_s19, %s261_s17  ;;  %p930_p5 = scmp.ne.s32.totalorder %s1413_s10, 0  ;;  %s1104_s12 = smul.u32 1280, %s1283_s29 }
  0x36   : > { %s268_s20 = sshll.u32 %s253_s18, 4  ;;  %s1193_s9 = scalar_lea.hbm %s1579_s0, 3200  ;;  %s1426_s20 = int_to_ptr.vmem [resolvable:$true] %s268_s20 }
  0x37   : > { %s1424_s23 = scalar_lea.hbm %s1579_s0, %s1104_s12 }
  0x38   : > { %s1189_s24 = scalar_lea.hbm %s1424_s23, %s1413_s10  ;;  %p1194_p2 = scmp.lt.s32.totalorder %s1424_s23, %s1579_s0 }
  0x39   : > { %p1190_p11 = scmp.ne.s32.totalorder %s1424_s23, %s1189_s24  ;;  %p1195_p0 = scmp.lt.s32.totalorder %s1193_s9, %s1189_s24 }
  0x3b   : > { %p1191_p12 = pnand %p1190_p11, %p930_p5  ;;  %p1196_p7 = por %p1195_p0, %p1194_p2 }
  0x3d   : > { %p1192_p1 = pneg %p1191_p12 }
  0x3f   : > { %p1197_p3 = pnand %p1196_p7, %p1192_p1 }
  0x41   : > { %1200 = shalt.err (!%p1197_p3)
}
  0x42   : > { %s1201_s12 = scalar_lea.vmem %s1426_s20, %s1413_s10  ;;  %s1288_s21 = smov [#allocation3]  }
  0x43   : > { %p1202_p8 = scmp.ne.s32.totalorder %s1426_s20, %s1201_s12  ;;  %s1205_s22 = sshll.u32 %s1288_s21, 4  ;;  %s1206_s22 = int_to_ptr.vmem [resolvable:$false] %s1205_s22 }
  0x44   : > { %s1207_s25 = scalar_lea.vmem %s1206_s22, 2560  ;;  %p1208_p6 = scmp.lt.s32.totalorder %s1426_s20, %s1206_s22 }
  0x45   : > { %p1203_p9 = pnand %p1202_p8, %p930_p5  ;;  %p1209_p11 = scmp.lt.s32.totalorder %s1207_s25, %s1201_s12 }
  0x47   : > { %p1204_p10 = pneg %p1203_p9  ;;  %p1210_p12 = por %p1209_p11, %p1208_p6 }
  0x49   : > { %p1211_p2 = pnand %p1210_p12, %p1204_p10 }
  0x4b   : > { %1214 = shalt.err (!%p1211_p2)
}
  0x4c   : > { %s1289_s24 = smov 640   ;;  %s1290_s30 = smov 40  }
  0x4d   : > { %274 = dma.hbm_to_vmem [thread:$0]  (%p930_p5), %s1424_s23, %s1413_s10, %s1426_s20, %s1416_s19, %s1289_s24, %s1289_s24, %s1290_s30  }
  0x4e PF: > { %280 = sbr.rel (%p1397_p13) target bundleno = 743 (0x2e7), region = 48  ;;  %s1455_s9 = sand.u32 (!%p1397_p13), 1, %s1275_s27  }
  0x4f   : > { %s1105_s17 = smul.u32 (!%p1397_p13), 80, %s1455_s9  ;;  %s283_s18 = scalar_lea.sflag (!%p1397_p13), [#allocation4], %s1455_s9 }
  0x50   : > { %p1594_p1 = scmp.ne.s32.totalorder (!%p1397_p13), %s1590_s13, 0 }
  0x51   : > { %s1459_s12 = scalar_lea.vmem (!%p1397_p13), [#allocation3], %s1105_s17 }
  0x53   : > { %1258 = dma.done.wait (%p1594_p1), %s283_s18, 1280  }
  0x54   : > { %1260 = vsyncadd (%p1594_p1), %s283_s18, 4294966016 }
  0x55   : > { %1262 = dma.done.wait (%p46_p4), [#allocation7], 8704  }
  0x56   : > { %1264 = vsyncadd (%p46_p4), [#allocation7], 4294958592  ;;  %v367_v0 = vld [vmem:[#allocation6 + $0xf8] sm:$0xff]  ;;  %v366_v4 = vld [vmem:[#allocation6 + $0xf0] sm:$0xff]  ;;  %vm418_vm0 = vcmask 1040384   ;;  %vm411_vm1 = vcmask 203776  }
  0x57   : > { %v399_v1 = vld [vmem:[#allocation6 + $0x1f8] sm:$0xff]  ;;  %947 = vmatprep.subr.mxu0 %v367_v0  ;;  %v398_v5 = vld [vmem:[#allocation6 + $0x1f0] sm:$0xff]  ;;  %v365_v8 = vld [vmem:[#allocation6 + $0xe8] sm:$0xff]  ;;  %vm1292_vm2 = vmmov 0   ;;  %vm752_vm3 = vcmask 523264   ;;  %s750_s30 = sld [smem:[#allocation2]] }
  0x58   : > { %v351_v2 = vld [vmem:[#allocation6 + $0x78] sm:$0xff]  ;;  %985 = vmatprep.subr.mxu1 %v399_v1  ;;  %v350_v6 = vld [vmem:[#allocation6 + $0x70] sm:$0xff]  ;;  %v397_v9 = vld [vmem:[#allocation6 + $0x1e8] sm:$0xff]  ;;  %s944_s17 = sshll.u32 %s1358_s6, 4  ;;  %s319_s18 = scalar_lea.vmem [#allocation8], %s1455_s9  ;;  %vm832_vm4 = vcmask 122880  }
  0x59   : > { %v383_v3 = vld [vmem:[#allocation6 + $0x178] sm:$0xff]  ;;  %948 = vmatpush3.msra.mxu0 %v351_v2  ;;  %v382_v7 = vld [vmem:[#allocation6 + $0x170] sm:$0xff]  ;;  %v349_v10 = vld [vmem:[#allocation6 + $0x68] sm:$0xff]  ;;  %s1543_s10 = scalar_lea.hbm %s1586_s7, %s944_s17  ;;  %s835_s19 = scalar_lea.sflag [#allocation5], %s1455_s9 }
  0x5a   : > { %986 = vmatpush3.msra.mxu1 %v383_v3  ;;  %949 = vmatprep.subr.mxu0 %v366_v4  ;;  %v381_v11 = vld [vmem:[#allocation6 + $0x168] sm:$0xff]  ;;  %v364_v12 = vld [vmem:[#allocation6 + $0xe0] sm:$0xff]  ;;  %v363_v16 = vld [vmem:[#allocation6 + $0xd8] sm:$0xff]  ;;  %p1595_p13 = scmp.ne.s32.totalorder %s1591_s14, 0  ;;  %s1293_s6 = smov [#allocation8]  }
  0x5b   : > { %987 = vmatprep.subr.mxu1 %v398_v5  ;;  %950 = vmatpush3.msra.mxu0 %v350_v6  ;;  %v396_v13 = vld [vmem:[#allocation6 + $0x1e0] sm:$0xff]  ;;  %v395_v17 = vld [vmem:[#allocation6 + $0x1d8] sm:$0xff]  ;;  %v362_v20 = vld [vmem:[#allocation6 + $0xd0] sm:$0xff]  ;;  %s1219_s23 = sshll.u32 %s1293_s6, 4  ;;  %s1220_s23 = int_to_ptr.vmem [resolvable:$false] %s1219_s23 }
  0x5c   : > { %988 = vmatpush3.msra.mxu1 %v382_v7  ;;  %951 = vmatprep.subr.mxu0 %v365_v8  ;;  %v348_v14 = vld [vmem:[#allocation6 + $0x60] sm:$0xff]  ;;  %v347_v18 = vld [vmem:[#allocation6 + $0x58] sm:$0xff]  ;;  %v394_v21 = vld [vmem:[#allocation6 + $0x1d0] sm:$0xff]  ;;  %s1221_s21 = scalar_lea.vmem %s1220_s23, 32 }
  0x5d   : > { %989 = vmatprep.subr.mxu1 %v397_v9  ;;  %v380_v15 = vld [vmem:[#allocation6 + $0x160] sm:$0xff]  ;;  %952 = vmatpush3.msra.mxu0 %v349_v10  ;;  %v379_v19 = vld [vmem:[#allocation6 + $0x158] sm:$0xff]  ;;  %v346_v22 = vld [vmem:[#allocation6 + $0x50] sm:$0xff] }
  0x5e   : > { %990 = vmatpush3.msra.mxu1 %v381_v11  ;;  %953 = vmatprep.subr.mxu0 %v364_v12  ;;  %v378_v23 = vld [vmem:[#allocation6 + $0x150] sm:$0xff]  ;;  %v361_v24 = vld [vmem:[#allocation6 + $0xc8] sm:$0xff]  ;;  %v360_v28 = vld [vmem:[#allocation6 + $0xc0] sm:$0xff] }
  0x5f   : > { %991 = vmatprep.subr.mxu1 %v396_v13  ;;  %954 = vmatpush3.msra.mxu0 %v348_v14  ;;  %v393_v25 = vld [vmem:[#allocation6 + $0x1c8] sm:$0xff]  ;;  %v392_v29 = vld [vmem:[#allocation6 + $0x1c0] sm:$0xff]  ;;  %v359_v32 = vld [vmem:[#allocation6 + $0xb8] sm:$0xff] }
  0x60   : > { %992 = vmatpush3.msra.mxu1 %v380_v15  ;;  %955 = vmatprep.subr.mxu0 %v363_v16  ;;  %v345_v26 = vld [vmem:[#allocation6 + $0x48] sm:$0xff]  ;;  %v344_v30 = vld [vmem:[#allocation6 + $0x40] sm:$0xff]  ;;  %v391_v33 = vld [vmem:[#allocation6 + $0x1b8] sm:$0xff] }
  0x61   : > { %993 = vmatprep.subr.mxu1 %v395_v17  ;;  %956 = vmatpush3.msra.mxu0 %v347_v18  ;;  %v377_v27 = vld [vmem:[#allocation6 + $0x148] sm:$0xff]  ;;  %v376_v31 = vld [vmem:[#allocation6 + $0x140] sm:$0xff]  ;;  %v343_v34 = vld [vmem:[#allocation6 + $0x38] sm:$0xff] }
  0x62   : > { %994 = vmatpush3.msra.mxu1 %v379_v19  ;;  %957 = vmatprep.subr.mxu0 %v362_v20  ;;  %v375_v35 = vld [vmem:[#allocation6 + $0x138] sm:$0xff]  ;;  %v358_v36 = vld [vmem:[#allocation6 + $0xb0] sm:$0xff]  ;;  %v357_v40 = vld [vmem:[#allocation6 + $0xa8] sm:$0xff] }
  0x63   : > { %995 = vmatprep.subr.mxu1 %v394_v21  ;;  %958 = vmatpush3.msra.mxu0 %v346_v22  ;;  %v390_v37 = vld [vmem:[#allocation6 + $0x1b0] sm:$0xff]  ;;  %v389_v41 = vld [vmem:[#allocation6 + $0x1a8] sm:$0xff]  ;;  %v356_v44 = vld [vmem:[#allocation6 + $0xa0] sm:$0xff] }
  0x64   : > { %996 = vmatpush3.msra.mxu1 %v378_v23  ;;  %959 = vmatprep.subr.mxu0 %v361_v24  ;;  %v342_v38 = vld [vmem:[#allocation6 + $0x30] sm:$0xff]  ;;  %v341_v42 = vld [vmem:[#allocation6 + $0x28] sm:$0xff]  ;;  %v388_v45 = vld [vmem:[#allocation6 + $0x1a0] sm:$0xff] }
  0x65   : > { %997 = vmatprep.subr.mxu1 %v393_v25  ;;  %960 = vmatpush3.msra.mxu0 %v345_v26  ;;  %v374_v39 = vld [vmem:[#allocation6 + $0x130] sm:$0xff]  ;;  %v373_v43 = vld [vmem:[#allocation6 + $0x128] sm:$0xff]  ;;  %v340_v46 = vld [vmem:[#allocation6 + $0x20] sm:$0xff] }
  0x66   : > { %998 = vmatpush3.msra.mxu1 %v377_v27  ;;  %961 = vmatprep.subr.mxu0 %v360_v28  ;;  %v372_v47 = vld [vmem:[#allocation6 + $0x120] sm:$0xff]  ;;  %v355_v48 = vld [vmem:[#allocation6 + $0x98] sm:$0xff]  ;;  %v354_v52 = vld [vmem:[#allocation6 + $0x90] sm:$0xff] }
  0x67   : > { %999 = vmatprep.subr.mxu1 %v392_v29  ;;  %962 = vmatpush3.msra.mxu0 %v344_v30  ;;  %v387_v49 = vld [vmem:[#allocation6 + $0x198] sm:$0xff]  ;;  %v386_v53 = vld [vmem:[#allocation6 + $0x190] sm:$0xff]  ;;  %v353_v56 = vld [vmem:[#allocation6 + $0x88] sm:$0xff] }
  0x68   : > { %1000 = vmatpush3.msra.mxu1 %v376_v31  ;;  %963 = vmatprep.subr.mxu0 %v359_v32  ;;  %v339_v50 = vld [vmem:[#allocation6 + $0x18] sm:$0xff]  ;;  %v338_v54 = vld [vmem:[#allocation6 + $0x10] sm:$0xff]  ;;  %v385_v57 = vld [vmem:[#allocation6 + $0x188] sm:$0xff] }
  0x69   : > { %1001 = vmatprep.subr.mxu1 %v391_v33  ;;  %964 = vmatpush3.msra.mxu0 %v343_v34  ;;  %v371_v51 = vld [vmem:[#allocation6 + $0x118] sm:$0xff]  ;;  %v370_v55 = vld [vmem:[#allocation6 + $0x110] sm:$0xff]  ;;  %v337_v58 = vld [vmem:[#allocation6 + $0x8] sm:$0xff] }
  0x6a   : > { %1002 = vmatpush3.msra.mxu1 %v375_v35  ;;  %965 = vmatprep.subr.mxu0 %v358_v36  ;;  %v369_v59 = vld [vmem:[#allocation6 + $0x108] sm:$0xff]  ;;  %v352_v60 = vld [vmem:[#allocation6 + $0x80] sm:$0xff]  ;;  %v403_v4 = vld [vmem:[#allocation6 + $0x218] sm:$0x1] }
  0x6b   : > { %1003 = vmatprep.subr.mxu1 %v390_v37  ;;  %966 = vmatpush3.msra.mxu0 %v342_v38  ;;  %v384_v61 = vld [vmem:[#allocation6 + $0x180] sm:$0xff]  ;;  %v327_v63 = vld [vmem:[%s1459_s12 + $0x8] sm:$0xff]  ;;  %v329_v1 = vld [vmem:[%s1459_s12 + $0x18] sm:$0xff] }
  0x6c   : > { %1004 = vmatpush3.msra.mxu1 %v374_v39  ;;  %967 = vmatprep.subr.mxu0 %v357_v40  ;;  %v336_v62 = vld [vmem:[#allocation6] sm:$0xff]  ;;  %v402_v7 = vld [vmem:[#allocation6 + $0x210] sm:$0xff]  ;;  %v664_v8 = vld [vmem:[%s1582_s3 + $0x78] sm:$0xff] }
  0x6d   : > { %1005 = vmatprep.subr.mxu1 %v389_v41  ;;  %968 = vmatpush3.msra.mxu0 %v341_v42  ;;  %v368_v0 = vld [vmem:[#allocation6 + $0x100] sm:$0xff]  ;;  %v333_v9 = vld [vmem:[%s1459_s12 + $0x38] sm:$0xff]  ;;  %v331_v10 = vld [vmem:[%s1459_s12 + $0x28] sm:$0xff] }
  0x6e   : > { %1006 = vmatpush3.msra.mxu1 %v373_v43  ;;  %969 = vmatprep.subr.mxu0 %v356_v44  ;;  %v326_v2 = vld [vmem:[%s1459_s12] sm:$0xff]  ;;  %v328_v3 = vld [vmem:[%s1459_s12 + $0x10] sm:$0xff]  ;;  %v401_v11 = vld [vmem:[#allocation6 + $0x208] sm:$0xff] }
  0x6f   : > { %1007 = vmatprep.subr.mxu1 %v388_v45  ;;  %970 = vmatpush3.msra.mxu0 %v340_v46  ;;  %v332_v5 = vld [vmem:[%s1459_s12 + $0x30] sm:$0xff]  ;;  %v334_v6 = vld [vmem:[%s1459_s12 + $0x40] sm:$0xff]  ;;  %v335_v15 = vld [vmem:[%s1459_s12 + $0x48] sm:$0xff] }
  0x70   : > { %1008 = vmatpush3.msra.mxu1 %v372_v47  ;;  %971 = vmatprep.subr.mxu0 %v355_v48  ;;  %v330_v12 = vld [vmem:[%s1459_s12 + $0x20] sm:$0xff]  ;;  %v662_v16 = vld [vmem:[%s1582_s3 + $0x68] sm:$0xff]  ;;  %v660_v18 = vld [vmem:[%s1582_s3 + $0x58] sm:$0xff]  ;;  %s847_s12 = sshll.u32 %s319_s18, 4  ;;  %s848_s12 = int_to_ptr.vmem [resolvable:$true] %s847_s12 }
  0x71   : > { %1009 = vmatprep.subr.mxu1 %v387_v49  ;;  %972 = vmatpush3.msra.mxu0 %v339_v50  ;;  %v400_v13 = vld [vmem:[#allocation6 + $0x200] sm:$0xff]  ;;  %v663_v14 = vld [vmem:[%s1582_s3 + $0x70] sm:$0xff]  ;;  %v658_v20 = vld [vmem:[%s1582_s3 + $0x48] sm:$0xff]  ;;  %s1215_s20 = scalar_lea.vmem %s848_s12, 16  ;;  %p1222_p7 = scmp.lt.s32.totalorder %s848_s12, %s1220_s23 }
  0x72   : > { %1010 = vmatpush3.msra.mxu1 %v371_v51  ;;  %973 = vmatprep.subr.mxu0 %v354_v52  ;;  %v661_v17 = vld [vmem:[%s1582_s3 + $0x60] sm:$0xff]  ;;  %v659_v19 = vld [vmem:[%s1582_s3 + $0x50] sm:$0xff]  ;;  %v656_v22 = vld [vmem:[%s1582_s3 + $0x38] sm:$0xff]  ;;  %p1216_p4 = scmp.ne.s32.totalorder %s848_s12, %s1215_s20  ;;  %p1223_p3 = scmp.lt.s32.totalorder %s1221_s21, %s1215_s20 }
  0x73   : > { %1011 = vmatprep.subr.mxu1 %v386_v53  ;;  %974 = vmatpush3.msra.mxu0 %v338_v54  ;;  %v657_v21 = vld [vmem:[%s1582_s3 + $0x40] sm:$0xff]  ;;  %v655_v23 = vld [vmem:[%s1582_s3 + $0x30] sm:$0xff]  ;;  %v654_v24 = vld [vmem:[%s1582_s3 + $0x28] sm:$0xff]  ;;  %v1291_v53 = vmov 0.0  }
  0x74   : > { %1012 = vmatpush3.msra.mxu1 %v370_v55  ;;  %975 = vmatprep.subr.mxu0 %v353_v56  ;;  %v653_v25 = vld [vmem:[%s1582_s3 + $0x20] sm:$0xff]  ;;  %v652_v26 = vld [vmem:[%s1582_s3 + $0x18] sm:$0xff]  ;;  %v651_v27 = vld [vmem:[%s1582_s3 + $0x10] sm:$0xff]  ;;  %p1217_p5 = pnand %p1216_p4, %p1595_p13  ;;  %p1224_p8 = por %p1223_p3, %p1222_p7 }
  0x75   : > { %1013 = vmatprep.subr.mxu1 %v385_v57  ;;  %976 = vmatpush3.msra.mxu0 %v337_v58  ;;  %v650_v28 = vld [vmem:[%s1582_s3 + $0x8] sm:$0xff]  ;;  %v649_v29 = vld [vmem:[%s1582_s3] sm:$0xff] }
  0x76   : > { %1014 = vmatpush3.msra.mxu1 %v369_v59  ;;  %977 = vmatprep.subr.mxu0 %v352_v60  ;;  %v936_v34 = vld [vmem:[%s1581_s2] ss:$0 sm:$0xff]  ;;  %p1218_p0 = pneg %p1217_p5 }
  0x77   : > { %1015 = vmatprep.subr.mxu1 %v384_v61  ;;  %978 = vmatpush3.msra.mxu0 %v336_v62  ;;  %v940_v54 = vld [vmem:[%s1583_s4] ss:$0 sm:$0xff]  ;;  %v751_v62 = vstv %s750_s30 }
  0x78   : > { %486 = vmatprep.mubr.f32.mxu0 %v327_v63  ;;  %1016 = vmatpush3.msra.mxu1 %v368_v0  ;;  %v749_v61 = vld [vmem:[%s1584_s5] sm:$0x1]  ;;  %p1225_p9 = pnand %p1224_p8, %p1218_p0 }
  0x79   : > { %561 = vmatprep.mubr.f32.mxu1 %v329_v1  ;;  %487 = vmatmul.mubr.f32.vlgmr.msra.gmra.mxu0 %v326_v2 }
  0x7a   : > { %562 = vmatmul.mubr.f32.vlgmr.msra.gmra.mxu1 %v328_v3  ;;  %1050 = vmatprep.subr.msk.mxu0 %vm418_vm0, %v403_v4 }
  0x7b   : > { %491 = vmatprep.mubr.f32.mxu0 %v332_v5  ;;  %1051 = vmatpush3.msk.msra.mxu0 %vm418_vm0, %v403_v4 }
  0x7c   : > { %566 = vmatprep.mubr.f32.mxu1 %v334_v6  ;;  %1052 = vmatprep.subr.mxu0 %v402_v7 }
  0x7d   : > { %1061 = vmatprep.subr.mxu1 %v664_v8  ;;  %1053 = vmatpush3.msra.mxu0 %v402_v7 }
  0x7e   : > { %567 = vmatmul.mubr.f32.gmra.mxu1 %v333_v9  ;;  %492 = vmatmul.mubr.f32.gmra.mxu0 %v331_v10 }
  0x7f   : > { %1054 = vmatprep.subr.mxu0 %v401_v11  ;;  %1058 = vmatprep.mubr.msk.f32.mxu0 %vm411_vm1, %v330_v12 }
  0x80   : > { %1055 = vmatpush3.msra.mxu0 %v401_v11  ;;  %1062 = vmatpush3.msra.mxu1 %v664_v8 }
  0x81   : > { %1056 = vmatprep.subr.mxu0 %v400_v13  ;;  %1063 = vmatprep.subr.mxu1 %v663_v14 }
  0x82   : > { %1057 = vmatpush3.msra.mxu0 %v400_v13  ;;  %1064 = vmatpush3.msra.mxu1 %v663_v14 }
  0x83   : > { %1059 = vmatmul.mubr.msk.f32.vlgmr.msra.gmra.mxu0 %vm411_vm1, %v335_v15  ;;  %1065 = vmatprep.subr.mxu1 %v662_v16 }
  0x84   : > { %1066 = vmatpush3.msra.mxu1 %v662_v16  ;;  %1096 = vmatprep.subr.mxu0 %v1291_v53 }
  0x85   : > { %1067 = vmatprep.subr.mxu1 %v661_v17  ;;  %1100 = vmatprep.mubr.msk.f32.mxu0 %vm1292_vm2, %v1291_v53 }
  0x86   : > { %1068 = vmatpush3.msra.mxu1 %v661_v17 }
  0x87   : > { %1069 = vmatprep.subr.mxu1 %v660_v18 }
  0x88   : > { %1070 = vmatpush3.msra.mxu1 %v660_v18 }
  0x89   : > { %1071 = vmatprep.subr.mxu1 %v659_v19 }
  0x8a   : > { %1072 = vmatpush3.msra.mxu1 %v659_v19 }
  0x8b   : > { %1073 = vmatprep.subr.mxu1 %v658_v20 }
  0x8c   : > { %1074 = vmatpush3.msra.mxu1 %v658_v20 }
  0x8d   : > { %1075 = vmatprep.subr.mxu1 %v657_v21 }
  0x8e   : > { %1076 = vmatpush3.msra.mxu1 %v657_v21 }
  0x8f   : > { %1077 = vmatprep.subr.mxu1 %v656_v22 }
  0x90   : > { %1078 = vmatpush3.msra.mxu1 %v656_v22 }
  0x91   : > { %1079 = vmatprep.subr.mxu1 %v655_v23 }
  0x92   : > { %1080 = vmatpush3.msra.mxu1 %v655_v23 }
  0x93   : > { %1081 = vmatprep.subr.mxu1 %v654_v24 }
  0x94   : > { %1082 = vmatpush3.msra.mxu1 %v654_v24 }
  0x95   : > { %1083 = vmatprep.subr.mxu1 %v653_v25 }
  0x96   : > { %1084 = vmatpush3.msra.mxu1 %v653_v25 }
  0x97   : > { %1085 = vmatprep.subr.mxu1 %v652_v26 }
  0x98   : > { %1086 = vmatpush3.msra.mxu1 %v652_v26 }
  0x99   : > { %1087 = vmatprep.subr.mxu1 %v651_v27 }
  0x9a   : > { %1088 = vmatpush3.msra.mxu1 %v651_v27 }
  0x9b   : > { %1089 = vmatprep.subr.mxu1 %v650_v28 }
  0x9c   : > { %1090 = vmatpush3.msra.mxu1 %v650_v28 }
  0x9d   : > { %1091 = vmatprep.subr.mxu1 %v649_v29 }
  0x9e   : > { %1092 = vmatpush3.msra.mxu1 %v649_v29 }
 0x139   : > { %v979_v30 = vpop.f32.mrf.mxu0 }
 0x13a   : > { %v1017_v31 = vpop.f32.mrf.mxu1 }
 0x13b   : > { %v980_v32 = vpop.f32.mrf.mxu0 }
 0x13c   : > { %v1018_v33 = vpop.f32.mrf.mxu1  ;;  %v981_v35 = vadd.f32 %v980_v32, %v979_v30 }
 0x13d   : > { %v1019_v41 = vadd.f32 %v1018_v33, %v1017_v31 }
 0x13e   : > { %v1020_v36 = vpop.f32.mrf.mxu1  ;;  %v982_v37 = vpop.f32.mrf.mxu0  ;;  %v489_v38 = vadd.f32 %v981_v35, %v936_v34 }
 0x140   : > { %v983_v39 = vpop.f32.mrf.mxu0  ;;  %v1021_v40 = vpop.f32.mrf.mxu1  ;;  %v564_v46 = vadd.f32 %v1019_v41, %v489_v38 }
 0x141   : > { %v984_v42 = vadd.f32 %v983_v39, %v982_v37  ;;  %v1022_v45 = vadd.f32 %v1021_v40, %v1020_v36 }
 0x143   : > { %v1060_v43 = vpop.f32.mrf.mxu0  ;;  %v494_v44 = vadd.f32 %v984_v42, %v936_v34 }
 0x145   : > { %v638_v47 = vpop.f32.mrf.mxu0  ;;  %v569_v48 = vadd.f32 %v1022_v45, %v494_v44 }
 0x146   : > { %v639_v49 = vadd.f32 %v638_v47, %v564_v46 }
 0x147   : > { %v644_v50 = vadd.f32 %v1060_v43, %v569_v48 }
 0x148   : > { %v647_v51 = vmax.f32 %v639_v49, 0.0 }
 0x149   : > { %v648_v52 = vmax.f32 %v644_v50, 0.0 }
 0x14a   : > { %1093 = vmatprep.mubr.f32.mxu1 %v647_v51 }
 0x14b   : > { %1094 = vmatmul.mubr.f32.vlgmr.msra.gmra.mxu1 %v648_v52 }
 0x20b   : > { %v1095_v55 = vpop.f32.mrf.mxu1 }
 0x20c   : > { %v744_v56 = vadd.f32 %v1095_v55, %v940_v54 }
 0x20d   : > { %v738_v57 = vpop.f32.mrf.mxu1 }
 0x20e   : > { %v748_v58 = vmax.f32 %v744_v56, 0.0  ;;  %v739_v59 = vadd.f32 %v940_v54, %v738_v57 }
 0x210   : > { %1097 = vmatpush3.xpose.msk.msra.mxu0 %vm752_vm3, %v748_v58  ;;  %v747_v60 = vmax.f32 %v739_v59, 0.0 }
 0x211   : > { %1098 = vmatprep.subr.mxu0 %v1291_v53 }
 0x214   : > { %1099 = vmatpush3.xpose.msk.msra.mxu0 %vm752_vm3, %v747_v60 }
 0x217   : > { %1101 = vmatmul.mubr.msk.f32.vlgmr.msra.gmra.mxu0 %vm752_vm3, %v749_v61 }
 0x2d7   : > { %v828_v63 = vpop.f32.mrf.mxu0 }
 0x2d8   : > { %v829_v0 = vadd.f32 %v828_v63, %v751_v62 }
 0x2d9   : > { %v1102_v1 = vpop.f32.mrf.mxu0 }
 0x2da   : > { %833 = vst.msk [vmem:[%s319_s18] sm:$0x1] %vm832_vm4, %v829_v0 }
 0x2db   : > { %1228 = shalt.err (!%p1225_p9)
}
 0x2dc   : > { %s1229_s22 = scalar_lea.hbm %s1543_s10, 16  ;;  %s1233_s24 = scalar_lea.hbm %s1586_s7, 48 }
 0x2dd   : > { %p1230_p10 = scmp.ne.s32.totalorder %s1543_s10, %s1229_s22  ;;  %p1234_p12 = scmp.lt.s32.totalorder %s1543_s10, %s1586_s7 }
 0x2de   : > { %p1235_p2 = scmp.lt.s32.totalorder %s1233_s24, %s1229_s22 }
 0x2df   : > { %p1231_p6 = pnand %p1230_p10, %p1595_p13 }
 0x2e0   : > { %p1236_p1 = por %p1235_p2, %p1234_p12 }
 0x2e1   : > { %p1232_p11 = pneg %p1231_p6 }
 0x2e3   : > { %p1237_p4 = pnand %p1236_p1, %p1232_p11 }
 0x2e5   : > { %1240 = shalt.err (!%p1237_p4)
}
 0x2e6   : > { %1111 = dma.vmem_to_hbm [thread:$0]  (%p1595_p13), %s848_s12, 16, %s1543_s10, %s835_s19  }
 0x2e7 PF: > { %p1123_p5 = scmp.ge.s32.totalorder %s1283_s29, 2  ;;  %s859_s18 = sand.u32 1, %s1271_s26  }
 0x2e8   : > { %p1596_p0 = scmp.ne.s32.totalorder %s1592_s15, 0  ;;  %s860_s13 = scalar_lea.sflag [#allocation5], %s859_s18 }
 0x2ea   : > { %p1118_p7 = pnand %p1123_p5, %p1596_p0 }
 0x2ec   : > { %p1119_p3 = pneg %p1118_p7 }
 0x2ee   : > { %1266 = dma.done.wait (%p1119_p3), %s860_s13, 16  }
 0x2ef   : > { %1268 = vsyncadd (%p1119_p3), %s860_s13, 4294967280  ;;  %p22_p8 = scmp.ge.s32.totalorder %s1362_s8, 5   ;;  %s1597_s26 = smov %s1275_s27 }
 0x2f0   : > { %s1598_s27 = smov %s1279_s28  ;;  %s1599_s28 = smov %s1374_s11 }
 0x2f1   : > { %s1600_s29 = smov %s1362_s8  ;;  %24 = sbr.rel (!%p22_p8) target bundleno = 8 (0x8), region = 97 }
 0x2f6   :  { %864 = vsyncpa [#allocation4], 1 }
 0x2f7   :  { %866 = vsyncpa [#allocation4 + $0x1], 1 }
 0x2f8   :  { %867 = vsyncpa [#allocation7], 1 }
 0x2f9   :  { %868 = vsyncpa [#allocation5], 1 }
 0x2fa   :  { %870 = vsyncpa [#allocation5 + $0x1], 1 }

</bundles_post_ra>
